<compile_context>
chip_gen: v7x
topology: tpu7x:2x2x1
jax: 0.10.0
libtpu: 0.0.40
codegen_flags: <defaults>
</compile_context>

<pallas_src>
import math

import jax
import jax.numpy as jnp
from jax.experimental import pallas as pl
from jax.experimental.pallas import tpu as pltpu


def _reduce_rows_kernel(x_ref, o_ref):
    # x_ref: (TR, TD) row tile of the folded input.
    # o_ref: (1, TD) accumulator block, resident across the last ("arbitrary")
    #        row-tile grid axis (index_map returns the same block each step).
    @pl.when(pl.program_id(1) == 0)
    def _():
        o_ref[...] = jnp.zeros_like(o_ref)

    # Cross-sublane (XLU) reduce + accumulate in f32; keepdims keeps the store
    # lane-aligned with no broadcast/reshape inside the kernel.
    o_ref[...] += jnp.sum(x_ref[...], axis=0, keepdims=True)


def _round_up(x, m):
    return ((x + m - 1) // m) * m


def reduce_sum_dim01(a):
    """Pallas equivalent of torch.sum(a, (0, 1)) for a rank-3 float32 array."""
    B, S, D = a.shape
    rows = B * S
    x2 = a.reshape(rows, D)  # contiguous reshape: no HBM copy

    # Fold factor so the kernel's lane dim (k * D) is a multiple of 128.
    # k == 1 (identity fold) when D is already a multiple of 128.
    k = 128 // math.gcd(D, 128)
    kd = k * D

    # Row tile: multiple of 8 sublanes, <= ~4 MiB per double-buffered input
    # buffer, capped at 2048 rows.
    target_bytes = 4 * 1024 * 1024
    tr_cap = max(8, min(2048, (target_bytes // (kd * 4)) // 8 * 8))
    rows_f_min = -(-rows // k)                      # cdiv(rows, k)
    tr = min(tr_cap, _round_up(rows_f_min, 8))
    rows_f = _round_up(rows_f_min, tr)

    # Zero-pad rows (zeros do not change the sum), then fold rows into lanes.
    pad = rows_f * k - rows
    if pad > 0:
        x2 = jnp.pad(x2, ((0, pad), (0, 0)))
    xf = x2.reshape(rows_f, kd)

    # Lane tile: gives a "parallel" grid axis (v7x megacore); 128-aligned.
    if kd <= 1024:
        td = kd
    elif kd % 512 == 0:
        td = 512
    elif kd % 256 == 0:
        td = 256
    else:
        td = 128
    nd = kd // td
    nr = rows_f // tr

    out = pl.pallas_call(
        _reduce_rows_kernel,
        out_shape=jax.ShapeDtypeStruct((1, kd), jnp.float32),
        grid_spec=pl.GridSpec(
            grid=(nd, nr),                          # reduction axis last
            in_specs=[pl.BlockSpec((tr, td), lambda j, i: (i, j))],
            out_specs=pl.BlockSpec((1, td), lambda j, i: (0, j)),
        ),
        compiler_params=pltpu.CompilerParams(
            dimension_semantics=("parallel", "arbitrary"),
        ),
    )(xf)

    # Undo the row->lane fold: (1, k*D) -> (k, D) -> sum over the fold axis.
    return out.reshape(k, D).sum(axis=0).astype(a.dtype)


if __name__ == "__main__":
    key = jax.random.PRNGKey(0)
    # Small shape consistent with the module's ([-1, -1, -1], float32) input.
    x = jax.random.normal(key, (2, 4, 16), dtype=jnp.float32)

    y = reduce_sum_dim01(x)
    jax.block_until_ready(y)

    ref = jnp.sum(x, axis=(0, 1))
    assert y.shape == ref.shape == (16,)
    assert jnp.allclose(y, ref, atol=1e-5, rtol=1e-5)

    print("KERNEL_OK")
</pallas_src>

<mosaic_0001>
module attributes {stable_mosaic.version = 11 : i64} {
  func.func @_reduce_rows_kernel(%arg0: i32, %arg1: i32, %arg2: memref<8x128xf32, #tpu.memory_space<vmem>>, %arg3: memref<1x128xf32, #tpu.memory_space<vmem>>) attributes {dimension_semantics = [#tpu.dimension_semantics<parallel>, #tpu.dimension_semantics<arbitrary>], iteration_bounds = array<i64: 1, 1>, scalar_prefetch = 0 : i64, scratch_operands = 0 : i64, tpu.core_type = #tpu.core_type<tc>, window_params = [{transform_indices = @transform_0, window_bounds = array<i64: 8, 128>}, {transform_indices = @transform_1, window_bounds = array<i64: 1, 128>}]} {
    %c0_i32 = arith.constant 0 : i32
    %0 = arith.cmpi eq, %arg1, %c0_i32 : i32
    %1 = arith.extui %0 : i1 to i32
    %c0_i32_0 = arith.constant 0 : i32
    %2 = arith.cmpi ne, %1, %c0_i32_0 : i32
    scf.if %2 {
      %cst_6 = arith.constant 0.000000e+00 : f32
      %9 = vector.broadcast %cst_6 : f32 to vector<1x128xf32>
      %c0_7 = arith.constant 0 : index
      %c0_8 = arith.constant 0 : index
      %10 = vector.load %arg3[%c0_7, %c0_8] : memref<1x128xf32, #tpu.memory_space<vmem>>, vector<1x128xf32>
      tpu.vector_store %arg3[%c0_7, %c0_8], %9 {strides = array<i32>} : memref<1x128xf32, #tpu.memory_space<vmem>>, vector<1x128xf32>,
    } else {
    }
    %c0 = arith.constant 0 : index
    %c0_1 = arith.constant 0 : index
    %3 = vector.load %arg3[%c0, %c0_1] : memref<1x128xf32, #tpu.memory_space<vmem>>, vector<1x128xf32>
    %c0_2 = arith.constant 0 : index
    %c0_3 = arith.constant 0 : index
    %4 = vector.load %arg2[%c0_2, %c0_3] : memref<8x128xf32, #tpu.memory_space<vmem>>, vector<8x128xf32>
    %cst = arith.constant dense<0.000000e+00> : vector<128xf32>
    %5 = vector.multi_reduction <add>, %4, %cst [0] : vector<8x128xf32> to vector<128xf32>
    %6 = vector.shape_cast %5 : vector<128xf32> to vector<1x128xf32>
    %7 = arith.addf %3, %6 : vector<1x128xf32>
    %c0_4 = arith.constant 0 : index
    %c0_5 = arith.constant 0 : index
    %8 = vector.load %arg3[%c0_4, %c0_5] : memref<1x128xf32, #tpu.memory_space<vmem>>, vector<1x128xf32>
    tpu.vector_store %arg3[%c0_4, %c0_5], %7 {strides = array<i32>} : memref<1x128xf32, #tpu.memory_space<vmem>>, vector<1x128xf32>,
    return
  }
  func.func @transform_0(%arg0: i32, %arg1: i32) -> (i32, i32) {
    %c0_i32 = arith.constant 0 : i32
    return %arg1, %arg0 : i32, i32
  }
  func.func @transform_1(%arg0: i32, %arg1: i32) -> (i32, i32) {
    %c0_i32 = arith.constant 0 : i32
    %c0_i32_0 = arith.constant 0 : i32
    return %c0_i32, %arg0 : i32, i32
  }
}

</mosaic_0001>

<bundles_post_ra>
// kernel: tpu_custom_call.1
= control target key start
LH: loop header
LB: loop body
LE: loop exit
PB: predicated region body
PF: predicated region fallthrough
CT: control target
= control target key end

     0   :  { %6 = vsyncpa [#allocation3], 0  ;;  %s139_s0 = inlined_call_operand.hbm [shape: f32[8,128], index: 0, kind: input, shape index: {}]   ;;  %s140_s1 = inlined_call_operand.hbm [shape: f32[1,128], index: 1, kind: output, shape index: {}]  }
   0x1   :  { %7 = vsyncpa [#allocation4], 0  ;;  %s102_s6 = smov [#allocation2]   ;;  %s54_s10 = scalar_lea.hbm %s139_s0, 128 }
   0x2   :  { %s14_s7 = sshll.u32 %s102_s6, 4  ;;  %p55_p0 = scmp.ne.s32.totalorder %s139_s0, %s54_s10  ;;  %s15_s7 = int_to_ptr.vmem [resolvable:$true] %s14_s7 }
   0x3   :  { %p58_p1 = scmp.lt.u32.totalorder %s54_s10, %s139_s0 }
   0x5   :  { %p60_p2 = pnand %p58_p1, %p55_p0 }
   0x7   :  { %63 = shalt.err (!%p60_p2)
}
   0x8   :  { %s64_s15 = scalar_lea.vmem %s15_s7, 128  ;;  %p69_p4 = scmp.lt.s32.totalorder %s15_s7, %s15_s7 }
   0x9   :  { %p65_p3 = scmp.ne.s32.totalorder %s15_s7, %s64_s15  ;;  %p70_p5 = scmp.lt.s32.totalorder %s64_s15, %s64_s15 }
   0xb   :  { %p71_p6 = por %p70_p5, %p69_p4 }
   0xd   :  { %p72_p7 = pnand %p71_p6, %p65_p3 }
   0xf   :  { %75 = shalt.err (!%p72_p7)
}
  0x10   :  { %17 = dma.hbm_to_vmem [thread:$0]  %s139_s0, 128, %s15_s7, [#allocation3]  }
  0x11   :  { %98 = dma.done.wait [#allocation3], 128  }
  0x12   :  { %99 = vsyncadd [#allocation3], 4294967168  ;;  %v103_v0 = vmov 0.0   ;;  %v27_v1 = vld [vmem:[#allocation2] sm:$0xff]  ;;  %s104_s18 = smov [#allocation5]  }
  0x13   :  { %25 = vst [vmem:[#allocation5] sm:$0x1] %v103_v0  ;;  %v28_v2 = vrot.slane %v27_v1, 4  ;;  %s42_s19 = sshll.u32 %s104_s18, 4  ;;  %s43_s19 = int_to_ptr.vmem [resolvable:$true] %s42_s19 }
  0x14   :  { %s76_s20 = scalar_lea.vmem %s43_s19, 16  ;;  %s80_s0 = scalar_lea.vmem %s43_s19, 32 }
  0x15   :  { %v29_v3 = vadd.f32 %v28_v2, %v27_v1  ;;  %p77_p8 = scmp.ne.s32.totalorder %s43_s19, %s76_s20  ;;  %p81_p9 = scmp.lt.s32.totalorder %s43_s19, %s43_s19 }
  0x16   :  { %p82_p10 = scmp.lt.s32.totalorder %s80_s0, %s76_s20 }
  0x17   :  { %v30_v4 = vrot.slane %v29_v3, 2 }
  0x18   :  { %p83_p11 = por %p82_p10, %p81_p9 }
  0x19   :  { %v31_v5 = vadd.f32 %v30_v4, %v29_v3 }
  0x1a   :  { %v26_v7 = vld [vmem:[#allocation5] sm:$0x1]  ;;  %p84_p12 = pnand %p83_p11, %p77_p8 }
  0x1b   :  { %v32_v6 = vrot.slane %v31_v5, 1 }
  0x1d   :  { %v33_v8 = vadd.f32 %v32_v6, %v31_v5 }
  0x1f   :  { %v34_v9 = vadd.f32 %v33_v8, %v26_v7 }
  0x21   :  { %35 = vst [vmem:[#allocation5] sm:$0x1] %v34_v9 }
  0x22   :  { %87 = shalt.err (!%p84_p12)
}
  0x23   :  { %s88_s23 = scalar_lea.hbm %s140_s1, 16 }
  0x24   :  { %p89_p13 = scmp.ne.s32.totalorder %s140_s1, %s88_s23  ;;  %p92_p0 = scmp.lt.u32.totalorder %s88_s23, %s140_s1 }
  0x26   :  { %p94_p1 = pnand %p92_p0, %p89_p13 }
  0x28   :  { %97 = shalt.err (!%p94_p1)
}
  0x29   :  { %45 = dma.vmem_to_hbm [thread:$0]  %s43_s19, 16, %s140_s1, [#allocation4]  }
  0x2a   :  { %100 = dma.done.wait [#allocation4], 16  }
  0x2b   :  { %101 = vsyncadd [#allocation4], 4294967280 }
  0x2c   :  { %49 = vsyncpa [#allocation3], 1 }
  0x2d   :  { %50 = vsyncpa [#allocation4], 1 }

</bundles_post_ra>
